<compile_context>
chip_gen: v7x
topology: tpu7x:2x2x1
jax: 0.10.0
libtpu: 0.0.40
codegen_flags: <defaults>
</compile_context>

<pallas_src>
import functools

import jax
import jax.numpy as jnp
import numpy as np
from jax.experimental import pallas as pl
from jax.experimental.pallas import tpu as pltpu


# ----------------------------- Pallas kernel --------------------------------
def attention_cnn_kernel(p_ref, wcat_ref, bcat_ref, vw_ref, y_ref, att_ref, *,
                         L_out, TB, F_out):
    """One batch tile: fused conv + word-projection matmul, tanh, softmax attention pool.

    p_ref   : (L_out*TB, K)           im2col patches, t-major rows (row = t*TB + b)
    wcat_ref: (K, F_out+FINAL)        [W_conv | W_conv @ W_word]
    bcat_ref: (1, F_out+FINAL)        [b_conv | b_conv @ W_word + b_word]
    vw_ref  : (1, FINAL)
    y_ref   : (L_out*TB, F_out+FINAL) fused output (conv columns + pre-tanh squish columns)
    att_ref : (TB, FINAL)             attention-pooled gram_squish
    """
    # Single fused MXU pass: cols [0:F_out] -> Conv1d output, cols [F_out:] -> conv @ W_word.
    y = jnp.dot(p_ref[...], wcat_ref[...],
                preferred_element_type=jnp.float32) + bcat_ref[...]
    # One store of the whole fused tile (36-lane rows) instead of a 4-lane conv slice store;
    # the wrapper slices the conv columns back out.
    y_ref[...] = y.astype(y_ref.dtype)

    # gram_squish = tanh(conv @ W_word + b_word).  Rows are t-major, so this reshape only
    # splits the sublane axis at multiples of 8 (TB % 8 == 0) — no relayout.
    g = jnp.tanh(y[:, F_out:])                                   # (L_out*TB, FINAL)
    g3 = g.reshape(L_out, TB, -1)                                # (L_out, TB, FINAL)

    # gram_att = g . vw_local (cross-lane reduce on the XLU), softmax over the sequence axis,
    # attention-weighted sum of gram_squish.
    att = jnp.sum(g3 * vw_ref[...], axis=2, keepdims=True)       # (L_out, TB, 1)
    m = jnp.max(att, axis=0, keepdims=True)
    e = jnp.exp(att - m)
    denom = jnp.sum(e, axis=0, keepdims=True)
    w = e * pl.reciprocal(denom, approx=True)                    # EUP vrcp (free slot)
    att_ref[...] = jnp.sum(w * g3, axis=0).astype(att_ref.dtype)  # (TB, FINAL)


def attention_cnn_pallas(patches, w_cat, b_cat, vw, *, ntiles, L_out, TB, K, F_out, FINAL):
    Ncat = F_out + FINAL
    M = L_out * TB
    assert patches.shape == (ntiles * M, K)
    assert TB % 8 == 0

    cost = pl.CostEstimate(
        flops=2 * ntiles * M * K * Ncat + 6 * ntiles * M * FINAL,
        transcendentals=ntiles * M * (FINAL + 2),
        bytes_accessed=4 * (ntiles * M * (K + Ncat) + K * Ncat + ntiles * TB * FINAL),
    )

    kernel = functools.partial(attention_cnn_kernel, L_out=L_out, TB=TB, F_out=F_out)

    return pl.pallas_call(
        kernel,
        out_shape=(
            jax.ShapeDtypeStruct((ntiles * M, Ncat), jnp.float32),    # fused conv|squish
            jax.ShapeDtypeStruct((ntiles * TB, FINAL), jnp.float32),  # attention vector
        ),
        grid=(ntiles,),
        in_specs=[
            pl.BlockSpec((M, K), lambda i: (i, 0)),          # im2col patch tile (t-major rows)
            pl.BlockSpec((K, Ncat), lambda i: (0, 0)),       # fused weights (resident)
            pl.BlockSpec((1, Ncat), lambda i: (0, 0)),       # fused bias
            pl.BlockSpec((1, FINAL), lambda i: (0, 0)),      # vw_local
        ],
        out_specs=(
            pl.BlockSpec((M, Ncat), lambda i: (i, 0)),
            pl.BlockSpec((TB, FINAL), lambda i: (i, 0)),
        ),
        compiler_params=pltpu.CompilerParams(
            dimension_semantics=("parallel",),               # batch tiles shard across TCs (v7x)
            vmem_limit_bytes=32 * 1024 * 1024,
        ),
        cost_estimate=cost,
    )(patches, w_cat, b_cat, vw)


# ------------------------------ JAX glue -------------------------------------
def _pick_tile(B):
    """Batch-tile rows: big tiles (few grid steps, MXU-filling M = L_out*TB, cap 128), but
    keep >= 2 grid steps whenever the batch spans more than one minimal 8-row tile so a
    2-TensorCore chip (v7x) can shard the "parallel" grid axis."""
    B8 = 8 * pl.cdiv(B, 8)
    TB = min(128, B8)
    if B8 > 8 and pl.cdiv(B8, TB) < 2:
        TB = 8 * pl.cdiv(pl.cdiv(B, 2), 8)
    ntiles = pl.cdiv(B, TB)
    return TB, ntiles


def forward(inp, params, cfg):
    B, L = inp.shape
    C, D, FS = cfg["IN_CHANNEL"], cfg["WORD_DIM"], cfg["FILTERS_SIZE"]
    F_out = cfg["FILTERS_SIZE"]          # Conv1d out_channels
    FINAL = cfg["FINAL_DIM"]
    K = D * FS
    L_out = L - FS + 1

    # Shared-embedding alias: every channel uses WV_MATRIX[C - 1].
    emb_table = params["WV_MATRIX"][C - 1]                                 # (V+2, D)
    emb = jnp.take(emb_table, inp, axis=0).astype(jnp.float32)             # (B, L, D)

    # Channel-summed conv weight (all C conv input channels see the identical sequence).
    w_conv = params["conv_w"].reshape(F_out, C, K).sum(axis=1).T           # (K, F_out)
    b_conv = params["conv_b"].reshape(1, F_out)
    w_word = params["weight_W_word"]                                       # (F_out, FINAL)
    b_word = params["bias_word"].reshape(1, FINAL)
    vw = params["vw_local"].reshape(1, FINAL)

    # Fuse conv -> W_word into a single MXU pass (all in f32; rounding-order note applies).
    # TODO(synk): optional bf16 cast of patches/w_cat (f32 accumulate) for v6e/v7x MXU fast path.
    w_cat = jnp.concatenate([w_conv, w_conv @ w_word], axis=1)             # (K, F_out+FINAL)
    b_cat = jnp.concatenate([b_conv, b_conv @ w_word + b_word], axis=1)    # (1, F_out+FINAL)

    # Batch tiling.
    TB, ntiles = _pick_tile(B)
    B_pad = ntiles * TB
    emb_p = jnp.pad(emb, ((0, B_pad - B), (0, 0), (0, 0)))                 # (B_pad, L, D)

    # Wrapper-side (XLA) im2col: feed the kernel a clean lane-aligned (L_out*TB, K) block
    # instead of L_out lane-unaligned sub-vreg slices inside the kernel.
    win = jnp.arange(L_out)[:, None] + jnp.arange(FS)[None, :]             # (L_out, FS)
    patches = emb_p[:, win, :].reshape(B_pad, L_out, K)                    # (B_pad, L_out, K)
    patches = (patches.reshape(ntiles, TB, L_out, K)
                      .transpose(0, 2, 1, 3)                               # t-major per tile
                      .reshape(ntiles * L_out * TB, K))

    y2d, att2d = attention_cnn_pallas(
        patches, w_cat, b_cat, vw,
        ntiles=ntiles, L_out=L_out, TB=TB, K=K, F_out=F_out, FINAL=FINAL)

    # Undo the t-major tile packing, slice the conv columns, drop batch padding (cheap XLA).
    y = y2d.reshape(ntiles, L_out, TB, F_out + FINAL)
    conv_res = (y[..., :F_out].transpose(0, 2, 1, 3)
                .reshape(B_pad, L_out, F_out))[:B]
    att_vec = att2d[:B]
    return conv_res, att_vec


def reference(inp, params, cfg):
    """Pure-JAX reference of the original (intended) semantics, for validation."""
    B, L = inp.shape
    C, D, FS = cfg["IN_CHANNEL"], cfg["WORD_DIM"], cfg["FILTERS_SIZE"]
    K = D * FS
    L_out = L - FS + 1
    emb_table = params["WV_MATRIX"][C - 1]
    emb = jnp.take(emb_table, inp, axis=0)
    x = jnp.concatenate([emb.reshape(B, 1, D * L)] * C, axis=1)
    patches = jnp.stack(
        [x[:, :, t * D: t * D + K].reshape(B, C * K) for t in range(L_out)], axis=1)
    conv = jnp.einsum("blk,fk->blf", patches,
                      params["conv_w"].reshape(cfg["FILTERS_SIZE"], C * K)) + params["conv_b"]
    g = jnp.tanh(jnp.einsum("blf,fd->bld", conv, params["weight_W_word"])
                 + params["bias_word"].reshape(1, 1, -1))
    att = jnp.einsum("bld,d->bl", g, params["vw_local"].reshape(-1))
    w = jax.nn.softmax(att, axis=-1)
    vec = jnp.einsum("bl,bld->bd", w, g)
    return conv, vec


# ------------------------------- main ----------------------------------------
if __name__ == "__main__":
    cfg = dict(BATCH_SIZE=2, MAX_SENT_LEN=16, WORD_DIM=8, VOCAB_SIZE=50,
               FILTERS_SIZE=4, FILTER_NUM=4, IN_CHANNEL=2, FINAL_DIM=32)
    assert cfg["FILTERS_SIZE"] == cfg["FILTER_NUM"]  # required for the mm in batch_matmul_bias

    key = jax.random.PRNGKey(0)
    ks = jax.random.split(key, 8)
    C, D, L = cfg["IN_CHANNEL"], cfg["WORD_DIM"], cfg["MAX_SENT_LEN"]
    V = cfg["VOCAB_SIZE"]
    K = D * cfg["FILTERS_SIZE"]

    params = {
        "WV_MATRIX": jax.random.uniform(ks[0], (C, V + 2, D), jnp.float32, -0.1, 0.1),
        "conv_w": jax.random.uniform(ks[1], (cfg["FILTERS_SIZE"], C, K), jnp.float32, -0.1, 0.1),
        "conv_b": jax.random.uniform(ks[2], (cfg["FILTERS_SIZE"],), jnp.float32, -0.1, 0.1),
        "weight_W_word": jax.random.uniform(ks[3], (cfg["FILTER_NUM"], cfg["FINAL_DIM"]),
                                            jnp.float32, -0.1, 0.1),
        "bias_word": jax.random.uniform(ks[4], (cfg["FINAL_DIM"], 1), jnp.float32, -0.1, 0.1),
        "vw_local": jax.random.uniform(ks[5], (cfg["FINAL_DIM"], 1), jnp.float32, -0.1, 0.1),
    }

    fwd = jax.jit(functools.partial(forward, cfg=cfg))

    # Case 1: module's own batch size (single tile).
    inp = jax.random.randint(ks[6], (cfg["BATCH_SIZE"], L), 0, V + 2, dtype=jnp.int32)
    conv_res, att_vec = fwd(inp, params)
    jax.block_until_ready((conv_res, att_vec))
    conv_ref, vec_ref = reference(inp, params, cfg)
    np.testing.assert_allclose(np.asarray(conv_res), np.asarray(conv_ref), rtol=1e-5, atol=1e-5)
    # The attention path uses the approximate EUP reciprocal for the softmax denominator.
    np.testing.assert_allclose(np.asarray(att_vec), np.asarray(vec_ref), rtol=5e-3, atol=5e-3)

    # Case 2: larger batch to exercise the multi-tile "parallel" grid path (>=2 tiles).
    inp2 = jax.random.randint(ks[7], (40, L), 0, V + 2, dtype=jnp.int32)
    conv2, vec2 = fwd(inp2, params)
    jax.block_until_ready((conv2, vec2))
    conv2_ref, vec2_ref = reference(inp2, params, cfg)
    np.testing.assert_allclose(np.asarray(conv2), np.asarray(conv2_ref), rtol=1e-5, atol=1e-5)
    np.testing.assert_allclose(np.asarray(vec2), np.asarray(vec2_ref), rtol=5e-3, atol=5e-3)

    print("KERNEL_OK")
</pallas_src>

<mosaic_0001>
module attributes {stable_mosaic.version = 11 : i64} {
  func.func @attention_cnn_kernel(%arg0: i32, %arg1: memref<104x32xf32, #tpu.memory_space<vmem>>, %arg2: memref<32x36xf32, #tpu.memory_space<vmem>>, %arg3: memref<1x36xf32, #tpu.memory_space<vmem>>, %arg4: memref<1x32xf32, #tpu.memory_space<vmem>>, %arg5: memref<104x36xf32, #tpu.memory_space<vmem>>, %arg6: memref<8x32xf32, #tpu.memory_space<vmem>>) attributes {dimension_semantics = [#tpu.dimension_semantics<parallel>], iteration_bounds = array<i64: 1>, scalar_prefetch = 0 : i64, scratch_operands = 0 : i64, tpu.core_type = #tpu.core_type<tc>, window_params = [{transform_indices = @transform_0, window_bounds = array<i64: 104, 32>}, {pipeline_mode = #tpu.pipeline_mode<synchronous>, transform_indices = @transform_1, window_bounds = array<i64: 32, 36>}, {pipeline_mode = #tpu.pipeline_mode<synchronous>, transform_indices = @transform_2, window_bounds = array<i64: 1, 36>}, {pipeline_mode = #tpu.pipeline_mode<synchronous>, transform_indices = @transform_3, window_bounds = array<i64: 1, 32>}, {transform_indices = @transform_4, window_bounds = array<i64: 104, 36>}, {transform_indices = @transform_5, window_bounds = array<i64: 8, 32>}]} {
    %c0 = arith.constant 0 : index
    %c0_0 = arith.constant 0 : index
    %0 = vector.load %arg1[%c0, %c0_0] : memref<104x32xf32, #tpu.memory_space<vmem>>, vector<104x32xf32>
    %c0_1 = arith.constant 0 : index
    %c0_2 = arith.constant 0 : index
    %1 = vector.load %arg2[%c0_1, %c0_2] : memref<32x36xf32, #tpu.memory_space<vmem>>, vector<32x36xf32>
    %cst = arith.constant dense<0.000000e+00> : vector<104x36xf32>
    %2 = tpu.matmul %0, %1, %cst {dimension_numbers = #tpu.dot_dimension_numbers<[1], [0], [0], [1], [0, 0, 1, 1], [], []>} : vector<104x32xf32>, vector<32x36xf32>, vector<104x36xf32> -> vector<104x36xf32>
    %c0_3 = arith.constant 0 : index
    %c0_4 = arith.constant 0 : index
    %3 = vector.load %arg3[%c0_3, %c0_4] : memref<1x36xf32, #tpu.memory_space<vmem>>, vector<1x36xf32>
    %4 = vector.broadcast %3 : vector<1x36xf32> to vector<104x36xf32>
    %5 = arith.addf %2, %4 : vector<104x36xf32>
    %c0_5 = arith.constant 0 : index
    %c0_6 = arith.constant 0 : index
    %6 = vector.load %arg5[%c0_5, %c0_6] : memref<104x36xf32, #tpu.memory_space<vmem>>, vector<104x36xf32>
    tpu.vector_store %arg5[%c0_5, %c0_6], %5 {strides = array<i32>} : memref<104x36xf32, #tpu.memory_space<vmem>>, vector<104x36xf32>,
    %7 = vector.extract_strided_slice %5 {offsets = [0, 4], sizes = [104, 32], strides = [1, 1]} : vector<104x36xf32> to vector<104x32xf32>
    %8 = math.tanh %7 : vector<104x32xf32>
    %9 = vector.shape_cast %8 : vector<104x32xf32> to vector<13x8x32xf32>
    %c0_7 = arith.constant 0 : index
    %c0_8 = arith.constant 0 : index
    %10 = vector.load %arg4[%c0_7, %c0_8] : memref<1x32xf32, #tpu.memory_space<vmem>>, vector<1x32xf32>
    %11 = vector.shape_cast %10 : vector<1x32xf32> to vector<1x1x32xf32>
    %12 = vector.broadcast %11 : vector<1x1x32xf32> to vector<13x8x32xf32>
    %13 = arith.mulf %9, %12 : vector<13x8x32xf32>
    %cst_9 = arith.constant dense<0.000000e+00> : vector<13x8xf32>
    %14 = vector.multi_reduction <add>, %13, %cst_9 [2] : vector<13x8x32xf32> to vector<13x8xf32>
    %15 = vector.shape_cast %14 : vector<13x8xf32> to vector<13x8x1xf32>
    %cst_10 = arith.constant dense<0xFF800000> : vector<8x1xf32>
    %16 = vector.multi_reduction <maximumf>, %15, %cst_10 [0] : vector<13x8x1xf32> to vector<8x1xf32>
    %17 = vector.shape_cast %16 : vector<8x1xf32> to vector<1x8x1xf32>
    %18 = vector.broadcast %17 : vector<1x8x1xf32> to vector<13x8x1xf32>
    %19 = arith.subf %15, %18 : vector<13x8x1xf32>
    %20 = math.exp %19 : vector<13x8x1xf32>
    %cst_11 = arith.constant dense<0.000000e+00> : vector<8x1xf32>
    %21 = vector.multi_reduction <add>, %20, %cst_11 [0] : vector<13x8x1xf32> to vector<8x1xf32>
    %22 = vector.shape_cast %21 : vector<8x1xf32> to vector<1x8x1xf32>
    %23 = tpu.reciprocal %22 {approx = true} : vector<1x8x1xf32> -> vector<1x8x1xf32>
    %24 = vector.broadcast %23 : vector<1x8x1xf32> to vector<13x8x1xf32>
    %25 = arith.mulf %20, %24 : vector<13x8x1xf32>
    %26 = vector.broadcast %25 : vector<13x8x1xf32> to vector<13x8x32xf32>
    %27 = arith.mulf %26, %9 : vector<13x8x32xf32>
    %cst_12 = arith.constant dense<0.000000e+00> : vector<8x32xf32>
    %28 = vector.multi_reduction <add>, %27, %cst_12 [0] : vector<13x8x32xf32> to vector<8x32xf32>
    %c0_13 = arith.constant 0 : index
    %c0_14 = arith.constant 0 : index
    %29 = vector.load %arg6[%c0_13, %c0_14] : memref<8x32xf32, #tpu.memory_space<vmem>>, vector<8x32xf32>
    tpu.vector_store %arg6[%c0_13, %c0_14], %28 {strides = array<i32>} : memref<8x32xf32, #tpu.memory_space<vmem>>, vector<8x32xf32>,
    return
  }
  func.func @transform_0(%arg0: i32) -> (i32, i32) {
    %c0_i32 = arith.constant 0 : i32
    %c0_i32_0 = arith.constant 0 : i32
    return %arg0, %c0_i32 : i32, i32
  }
  func.func @transform_1(%arg0: i32) -> (i32, i32) {
    %c0_i32 = arith.constant 0 : i32
    %c0_i32_0 = arith.constant 0 : i32
    %c0_i32_1 = arith.constant 0 : i32
    return %c0_i32, %c0_i32_0 : i32, i32
  }
  func.func @transform_2(%arg0: i32) -> (i32, i32) {
    %c0_i32 = arith.constant 0 : i32
    %c0_i32_0 = arith.constant 0 : i32
    %c0_i32_1 = arith.constant 0 : i32
    return %c0_i32, %c0_i32_0 : i32, i32
  }
  func.func @transform_3(%arg0: i32) -> (i32, i32) {
    %c0_i32 = arith.constant 0 : i32
    %c0_i32_0 = arith.constant 0 : i32
    %c0_i32_1 = arith.constant 0 : i32
    return %c0_i32, %c0_i32_0 : i32, i32
  }
  func.func @transform_4(%arg0: i32) -> (i32, i32) {
    %c0_i32 = arith.constant 0 : i32
    %c0_i32_0 = arith.constant 0 : i32
    return %arg0, %c0_i32 : i32, i32
  }
  func.func @transform_5(%arg0: i32) -> (i32, i32) {
    %c0_i32 = arith.constant 0 : i32
    %c0_i32_0 = arith.constant 0 : i32
    return %arg0, %c0_i32 : i32, i32
  }
}

</mosaic_0001>

<bundles_post_ra>
// kernel: forward.1
= control target key start
LH: loop header
LB: loop body
LE: loop exit
PB: predicated region body
PF: predicated region fallthrough
CT: control target
= control target key end

     0   :  { %v630_v0 = vmov 0.0|0.0   ;;  %vm631_vm0 = vmmov 0   ;;  %v632_v6 = vmov 0.0   ;;  %s633_s28 = smov 4   ;;  %vm43_vm1 = vcmask 261120   ;;  %s634_s17 = smov 124   ;;  %s926_s1 = inlined_call_operand.vmem [shape: f32[32,36], index: 1, kind: input, shape index: {}]   ;;  %s927_s3 = inlined_call_operand.vmem [shape: f32[1,32], index: 3, kind: input, shape index: {}]   ;;  %s928_s0 = inlined_call_operand.vmem [shape: f32[104,32], index: 0, kind: input, shape index: {}]   ;;  %s929_s2 = inlined_call_operand.vmem [shape: f32[1,36], index: 2, kind: input, shape index: {}]   ;;  %s930_s4 = inlined_call_operand.vmem [shape: f32[104,36], index: 4, kind: output, shape index: {0}]   ;;  %s931_s5 = inlined_call_operand.vmem [shape: f32[8,32], index: 5, kind: output, shape index: {1}]  }
   0x1   :  { %561 = vmatprep.subr.bf16.mxu0 %v630_v0  ;;  %567 = vmatprep.subr.bf16.mxu1 %v630_v0  ;;  %v32_v1 = vld [vmem:[%s926_s1] sm:$0xff]  ;;  %v33_v2 = vld [vmem:[%s926_s1 + $0x8] sm:$0xff]  ;;  %v34_v3 = vld [vmem:[%s926_s1 + $0x10] sm:$0xff]  ;;  %vm213_vm2 = vcmask 293888   ;;  %vm443_vm3 = vcmask 293920  }
   0x2   :  { %v562_v4 = vpack.c.bf16 %v33_v2, %v32_v1  ;;  %v35_v5 = vld [vmem:[%s926_s1 + $0x18] sm:$0xff]  ;;  %522 = vmatprep.mubr.msk.f32.mxu0 %vm631_vm0, %v632_v6  ;;  %543 = vmatprep.mubr.msk.f32.mxu1 %vm631_vm0, %v632_v6  ;;  %v496_v8 = vld [vmem:[%s927_s3] ss:$0 sm:$0xff]  ;;  %v20_v11 = vld [vmem:[%s928_s0 + $0x8] sm:$0xff] }
   0x3   :  { %v565_v7 = vpack.c.bf16 %v35_v5, %v34_v3  ;;  %246 = vrot.lane.b32.xlu0 %v496_v8, %s633_s28  ;;  %v19_v9 = vld [vmem:[%s928_s0] sm:$0xff]  ;;  %v26_v10 = vld [vmem:[%s928_s0 + $0x38] sm:$0xff]  ;;  %v21_v13 = vld [vmem:[%s928_s0 + $0x10] sm:$0xff] }
   0x4   :  { %563 = vmatpush3.bf16.msra.mxu0 %v562_v4  ;;  %569 = vmatpush3.bf16.msra.mxu1 %v562_v4  ;;  %v27_v12 = vld [vmem:[%s928_s0 + $0x40] sm:$0xff]  ;;  %v28_v14 = vld [vmem:[%s928_s0 + $0x48] sm:$0xff]  ;;  %v22_v15 = vld [vmem:[%s928_s0 + $0x18] sm:$0xff] }
   0x5   :  { %564 = vmatprep.subr.bf16.mxu0 %v630_v0  ;;  %568 = vmatprep.subr.bf16.mxu1 %v630_v0  ;;  %v29_v16 = vld [vmem:[%s928_s0 + $0x50] sm:$0xff]  ;;  %v23_v17 = vld [vmem:[%s928_s0 + $0x20] sm:$0xff]  ;;  %v30_v18 = vld [vmem:[%s928_s0 + $0x58] sm:$0xff] }
   0x6   :  { %v24_v19 = vld [vmem:[%s928_s0 + $0x28] sm:$0xff]  ;;  %v31_v20 = vld [vmem:[%s928_s0 + $0x60] sm:$0xff]  ;;  %v25_v21 = vld [vmem:[%s928_s0 + $0x30] sm:$0xff] }
   0x7   :  { %v748_v22 = vld [vmem:[%s929_s2] ss:$0 sm:$0xff] }
   0x8   :  { %566 = vmatpush3.bf16.msra.mxu0 %v565_v7  ;;  %570 = vmatpush3.bf16.msra.mxu1 %v565_v7 }
   0xb   :  { %523 = vmatmul.mubr.msk.f32.vlgmr.msra.gmra.mrb[0].mxu0 %vm43_vm1, %v19_v9  ;;  %544 = vmatmul.mubr.msk.f32.vlgmr.msra.gmra.mrb[0].mxu1 %vm43_vm1, %v26_v10 }
   0xc   :  { %525 = vmatprep.mubr.msk.f32.mxu0 %vm631_vm0, %v632_v6  ;;  %546 = vmatprep.mubr.msk.f32.mxu1 %vm631_vm0, %v632_v6 }
   0xf   :  { %526 = vmatmul.mubr.msk.f32.gmra.mrb[2].mxu0 %vm43_vm1, %v20_v11  ;;  %547 = vmatmul.mubr.msk.f32.gmra.mrb[2].mxu1 %vm43_vm1, %v27_v12 }
  0x10   :  { %528 = vmatprep.mubr.msk.f32.mxu0 %vm631_vm0, %v632_v6  ;;  %549 = vmatprep.mubr.msk.f32.mxu1 %vm631_vm0, %v632_v6 }
  0x13   :  { %529 = vmatmul.mubr.msk.f32.gmra.mrb[4].mxu0 %vm43_vm1, %v21_v13  ;;  %550 = vmatmul.mubr.msk.f32.gmra.mrb[4].mxu1 %vm43_vm1, %v28_v14 }
  0x14   :  { %531 = vmatprep.mubr.msk.f32.mxu0 %vm631_vm0, %v632_v6  ;;  %552 = vmatprep.mubr.msk.f32.mxu1 %vm631_vm0, %v632_v6 }
  0x17   :  { %532 = vmatmul.mubr.msk.f32.gmra.mrb[6].mxu0 %vm43_vm1, %v22_v15  ;;  %553 = vmatmul.mubr.msk.f32.gmra.mrb[6].mxu1 %vm43_vm1, %v29_v16 }
  0x18   :  { %534 = vmatprep.mubr.msk.f32.mxu0 %vm631_vm0, %v632_v6  ;;  %555 = vmatprep.mubr.msk.f32.mxu1 %vm631_vm0, %v632_v6 }
  0x1b   :  { %535 = vmatmul.mubr.msk.f32.gmra.mrb[8].mxu0 %vm43_vm1, %v23_v17  ;;  %556 = vmatmul.mubr.msk.f32.gmra.mrb[8].mxu1 %vm43_vm1, %v30_v18 }
  0x1c   :  { %537 = vmatprep.mubr.msk.f32.mxu0 %vm631_vm0, %v632_v6  ;;  %558 = vmatprep.mubr.msk.f32.mxu1 %vm631_vm0, %v632_v6 }
  0x1f   :  { %538 = vmatmul.mubr.msk.f32.gmra.mrb[10].mxu0 %vm43_vm1, %v24_v19  ;;  %559 = vmatmul.mubr.msk.f32.gmra.mrb[10].mxu1 %vm43_vm1, %v31_v20 }
  0x20   :  { %540 = vmatprep.mubr.msk.f32.mxu0 %vm631_vm0, %v632_v6 }
  0x23   :  { %541 = vmatmul.mubr.msk.f32.gmra.mrb[12].mxu0 %vm43_vm1, %v25_v21 }
  0x75   :  { %v780_v41 = vpop.permute.xlu0 %246 }
  0xde   :  { %v149_v23 = vpop.f32.mrb[0].mxu0  ;;  %v184_v24 = vpop.f32.mrb[0].mxu1 }
  0xdf   :  { %v150_v25 = vadd.f32 %v748_v22, %v149_v23  ;;  %v524_v26 = vpop.f32.mrb[1].mxu0  ;;  %v185_v27 = vadd.f32 %v748_v22, %v184_v24  ;;  %v545_v28 = vpop.f32.mrb[1].mxu1 }
  0xe1   :  { %214 = vst.msk [vmem:[%s930_s4] sm:$0xff] %vm213_vm2, %v150_v25  ;;  %576 = vtanh.f32 %v150_v25  ;;  %221 = vst.msk [vmem:[%s930_s4 + $0x38] sm:$0xff] %vm213_vm2, %v185_v27 }
  0xe2   :  { %578 = vtanh.f32 %v185_v27  ;;  %v154_v29 = vpop.f32.mrb[2].mxu0  ;;  %v189_v30 = vpop.f32.mrb[2].mxu1 }
  0xe3   :  { %v155_v31 = vadd.f32 %v748_v22, %v154_v29  ;;  %v190_v32 = vadd.f32 %v748_v22, %v189_v30  ;;  %v527_v33 = vpop.f32.mrb[3].mxu0  ;;  %v548_v34 = vpop.f32.mrb[3].mxu1 }
  0xe5   :  { %215 = vst.msk [vmem:[%s930_s4 + $0x8] sm:$0xff] %vm213_vm2, %v155_v31  ;;  %580 = vtanh.f32 %v155_v31  ;;  %222 = vst.msk [vmem:[%s930_s4 + $0x40] sm:$0xff] %vm213_vm2, %v190_v32 }
  0xe6   :  { %v159_v35 = vpop.f32.mrb[4].mxu0  ;;  %v194_v36 = vpop.f32.mrb[4].mxu1  ;;  %582 = vtanh.f32 %v190_v32 }
  0xe7   :  { %v160_v37 = vadd.f32 %v748_v22, %v159_v35  ;;  %v195_v38 = vadd.f32 %v748_v22, %v194_v36  ;;  %v530_v39 = vpop.f32.mrb[5].mxu0  ;;  %v551_v40 = vpop.f32.mrb[5].mxu1 }
  0xe9   :  { %216 = vst.msk [vmem:[%s930_s4 + $0x10] sm:$0xff] %vm213_vm2, %v160_v37  ;;  %584 = vtanh.f32 %v160_v37  ;;  %223 = vst.msk [vmem:[%s930_s4 + $0x48] sm:$0xff] %vm213_vm2, %v195_v38 }
  0xea   :  { %v164_v42 = vpop.f32.mrb[6].mxu0  ;;  %v199_v43 = vpop.f32.mrb[6].mxu1  ;;  %586 = vtanh.f32 %v195_v38 }
  0xeb   :  { %v782_v44 = vpop.eup %576  ;;  %v165_v45 = vadd.f32 %v748_v22, %v164_v42  ;;  %v200_v46 = vadd.f32 %v748_v22, %v199_v43  ;;  %v533_v47 = vpop.f32.mrb[7].mxu0 }
  0xec   :  { %v554_v48 = vpop.f32.mrb[7].mxu1  ;;  %v786_v49 = vpop.eup %578  ;;  %v249_v50 = vmul.f32 %v782_v44, %v780_v41 }
  0xed   :  { %217 = vst.msk [vmem:[%s930_s4 + $0x18] sm:$0xff] %vm213_vm2, %v165_v45  ;;  %588 = vtanh.f32 %v165_v45  ;;  %224 = vst.msk [vmem:[%s930_s4 + $0x50] sm:$0xff] %vm213_vm2, %v200_v46  ;;  %v256_v53 = vmul.f32 %v786_v49, %v780_v41 }
  0xee   :  { %v204_v51 = vpop.f32.mrb[8].mxu1  ;;  %275 = vrot.lane.b32.xlu0 %v249_v50, %s634_s17  ;;  %v169_v52 = vpop.f32.mrb[8].mxu0  ;;  %590 = vtanh.f32 %v200_v46 }
  0xef   :  { %v801_v54 = vpop.eup %580  ;;  %v205_v55 = vadd.f32 %v748_v22, %v204_v51  ;;  %v170_v56 = vadd.f32 %v748_v22, %v169_v52  ;;  %v536_v57 = vpop.f32.mrb[9].mxu0 }
  0xf0   :  { %v557_v58 = vpop.f32.mrb[9].mxu1  ;;  %v250_v59 = vmul.f32 %v801_v54, %v780_v41  ;;  %v807_v60 = vpop.eup %582 }
  0xf1   :  { %225 = vst.msk [vmem:[%s930_s4 + $0x58] sm:$0xff] %vm213_vm2, %v205_v55  ;;  %218 = vst.msk [vmem:[%s930_s4 + $0x20] sm:$0xff] %vm213_vm2, %v170_v56  ;;  %592 = vtanh.f32 %v170_v56  ;;  %v257_v4 = vmul.f32 %v807_v60, %v780_v41 }
  0xf2   :  { %v209_v61 = vpop.f32.mrb[10].mxu1  ;;  %289 = vrot.lane.b32.xlu0 %v256_v53, %s634_s17  ;;  %277 = vrot.lane.b32.xlu1 %v250_v59, %s634_s17  ;;  %v174_v62 = vpop.f32.mrb[10].mxu0 }
  0xf3   :  { %v819_v63 = vpop.eup %584  ;;  %v210_v0 = vadd.f32 %v748_v22, %v209_v61  ;;  %v175_v1 = vadd.f32 %v748_v22, %v174_v62  ;;  %v539_v2 = vpop.f32.mrb[11].mxu0 }
  0xf4   :  { %v560_v3 = vpop.f32.mrb[11].mxu1  ;;  %v251_v5 = vmul.f32 %v819_v63, %v780_v41  ;;  %v827_v6 = vpop.eup %586 }
  0xf5   :  { %226 = vst.msk [vmem:[%s930_s4 + $0x60] sm:$0xff] %vm213_vm2, %v210_v0  ;;  %219 = vst.msk [vmem:[%s930_s4 + $0x28] sm:$0xff] %vm213_vm2, %v175_v1  ;;  %594 = vtanh.f32 %v175_v1  ;;  %v258_v11 = vmul.f32 %v827_v6, %v780_v41 }
  0xf6   :  { %291 = vrot.lane.b32.xlu1 %v257_v4, %s634_s17  ;;  %279 = vrot.lane.b32.xlu0 %v251_v5, %s634_s17  ;;  %v179_v7 = vpop.f32.mrb[12].mxu0  ;;  %596 = vtanh.f32 %v205_v55 }
  0xf7   :  { %v839_v8 = vpop.eup %588  ;;  %v180_v9 = vadd.f32 %v748_v22, %v179_v7  ;;  %v542_v10 = vpop.f32.mrb[13].mxu0 }
  0xf8   :  { %v252_v12 = vmul.f32 %v839_v8, %v780_v41  ;;  %v846_v13 = vpop.eup %590 }
  0xf9   :  { %220 = vst.msk [vmem:[%s930_s4 + $0x30] sm:$0xff] %vm213_vm2, %v180_v9  ;;  %598 = vtanh.f32 %v180_v9  ;;  %v259_v14 = vmul.f32 %v846_v13, %v780_v41 }
  0xfa   :  { %293 = vrot.lane.b32.xlu0 %v258_v11, %s634_s17  ;;  %281 = vrot.lane.b32.xlu1 %v252_v12, %s634_s17  ;;  %600 = vtanh.f32 %v210_v0 }
  0xfb   :  { %v856_v15 = vpop.eup %592 }
  0xfc   :  { %v253_v17 = vmul.f32 %v856_v15, %v780_v41 }
  0xfe   :  { %295 = vrot.lane.b32.xlu1 %v259_v14, %s634_s17 }
  0xff   :  { %v859_v16 = vpop.eup %594 }
 0x100   :  { %v254_v18 = vmul.f32 %v859_v16, %v780_v41  ;;  %v865_v19 = vpop.eup %596 }
 0x101   :  { %v260_v23 = vmul.f32 %v865_v19, %v780_v41 }
 0x102   :  { %283 = vrot.lane.b32.xlu1 %v253_v17, %s634_s17  ;;  %285 = vrot.lane.b32.xlu0 %v254_v18, %s634_s17 }
 0x103   :  { %v868_v20 = vpop.eup %598 }
 0x104   :  { %v255_v21 = vmul.f32 %v868_v20, %v780_v41  ;;  %v873_v22 = vpop.eup %600 }
 0x105   :  { %v261_v24 = vmul.f32 %v873_v22, %v780_v41 }
 0x106   :  { %287 = vrot.lane.b32.xlu1 %v255_v21, %s634_s17  ;;  %297 = vrot.lane.b32.xlu0 %v260_v23, %s634_s17 }
 0x10a   :  { %299 = vrot.lane.b32.xlu1 %v261_v24, %s634_s17 }
 0x160   :  { %v276_v25 = vpop.permute.xlu0 %275 }
 0x161   :  { %v314_v26 = vsel %vm43_vm1, %v276_v25, 0.0 }
 0x162   :  { %315 = vadd.xlane.f32.xlu0 %v314_v26 }
 0x164   :  { %v290_v27 = vpop.permute.xlu0 %289  ;;  %v278_v28 = vpop.permute.xlu1 %277 }
 0x165   :  { %v335_v29 = vsel %vm43_vm1, %v290_v27, 0.0  ;;  %v317_v32 = vsel %vm43_vm1, %v278_v28, 0.0 }
 0x166   :  { %336 = vadd.xlane.f32.xlu0 %v335_v29 }
 0x168   :  { %v292_v30 = vpop.permute.xlu1 %291  ;;  %v280_v31 = vpop.permute.xlu0 %279 }
 0x169   :  { %v338_v33 = vsel %vm43_vm1, %v292_v30, 0.0  ;;  %v320_v35 = vsel %vm43_vm1, %v280_v31, 0.0 }
 0x16a   :  { %318 = vadd.xlane.f32.xlu0 %v317_v32  ;;  %339 = vadd.xlane.f32.xlu1 %v338_v33 }
 0x16c   :  { %v282_v34 = vpop.permute.xlu1 %281  ;;  %v294_v37 = vpop.permute.xlu0 %293 }
 0x16d   :  { %v323_v36 = vsel %vm43_vm1, %v282_v34, 0.0  ;;  %v341_v39 = vsel %vm43_vm1, %v294_v37, 0.0 }
 0x16e   :  { %321 = vadd.xlane.f32.xlu0 %v320_v35  ;;  %324 = vadd.xlane.f32.xlu1 %v323_v36 }
 0x170   :  { %v296_v38 = vpop.permute.xlu1 %295 }
 0x171   :  { %v344_v40 = vsel %vm43_vm1, %v296_v38, 0.0 }
 0x172   :  { %342 = vadd.xlane.f32.xlu0 %v341_v39  ;;  %345 = vadd.xlane.f32.xlu1 %v344_v40 }
 0x174   :  { %v284_v41 = vpop.permute.xlu1 %283  ;;  %v286_v42 = vpop.permute.xlu0 %285 }
 0x175   :  { %v326_v43 = vsel %vm43_vm1, %v284_v41, 0.0  ;;  %v329_v45 = vsel %vm43_vm1, %v286_v42, 0.0 }
 0x176   :  { %327 = vadd.xlane.f32.xlu1 %v326_v43  ;;  %330 = vadd.xlane.f32.xlu0 %v329_v45 }
 0x178   :  { %v288_v46 = vpop.permute.xlu1 %287  ;;  %v298_v47 = vpop.permute.xlu0 %297 }
 0x179   :  { %v332_v48 = vsel %vm43_vm1, %v288_v46, 0.0  ;;  %v347_v50 = vsel %vm43_vm1, %v298_v47, 0.0 }
 0x17a   :  { %333 = vadd.xlane.f32.xlu1 %v332_v48  ;;  %348 = vadd.xlane.f32.xlu0 %v347_v50 }
 0x17c   :  { %v300_v51 = vpop.permute.xlu1 %299 }
 0x17d   :  { %v350_v52 = vsel %vm43_vm1, %v300_v51, 0.0 }
 0x17e   :  { %351 = vadd.xlane.f32.xlu1 %v350_v52 }
 0x1ef   :  { %v316_v53 = vpop.xlane.xlu0 %315 }
 0x1f3   :  { %v337_v55 = vpop.xlane.xlu0 %336 }
 0x1f7   :  { %v319_v56 = vpop.xlane.xlu0 %318  ;;  %v340_v57 = vpop.xlane.xlu1 %339 }
 0x1fb   :  { %v322_v58 = vpop.xlane.xlu0 %321  ;;  %v325_v59 = vpop.xlane.xlu1 %324 }
 0x1fc   :  { %v356_v9 = vmax.f32 %v325_v59, %v337_v55 }
 0x1ff   :  { %v343_v61 = vpop.xlane.xlu0 %342  ;;  %v346_v62 = vpop.xlane.xlu1 %345 }
 0x203   :  { %v328_v0 = vpop.xlane.xlu1 %327  ;;  %v331_v1 = vpop.xlane.xlu0 %330 }
 0x204   :  { %v353_v2 = vmax.f32 %v316_v53, %v328_v0  ;;  %v354_v4 = vmax.f32 %v319_v56, %v331_v1 }
 0x206   :  { %v357_v11 = vmax.f32 %v353_v2, %v340_v57  ;;  %v358_v14 = vmax.f32 %v354_v4, %v343_v61 }
 0x207   :  { %v334_v3 = vpop.xlane.xlu1 %333  ;;  %v349_v7 = vpop.xlane.xlu0 %348 }
 0x208   :  { %v355_v5 = vmax.f32 %v322_v58, %v334_v3  ;;  %v360_v17 = vmax.f32 %v356_v9, %v349_v7 }
 0x20a   :  { %v359_v10 = vmax.f32 %v355_v5, %v346_v62 }
 0x20b   :  { %v352_v12 = vpop.xlane.xlu1 %351 }
 0x20c   :  { %v361_v18 = vmax.f32 %v357_v11, %v352_v12  ;;  %v363_v21 = vmax.f32 %v359_v10, %v360_v17 }
 0x20e   :  { %v362_v23 = vmax.f32 %v361_v18, %v358_v14 }
 0x210   :  { %v364_v24 = vmax.f32 %v362_v23, %v363_v21 }
 0x212   :  { %v365_v25 = vsub.f32 %v316_v53, %v364_v24  ;;  %v366_v26 = vsub.f32 %v319_v56, %v364_v24  ;;  %v367_v27 = vsub.f32 %v322_v58, %v364_v24  ;;  %v368_v28 = vsub.f32 %v325_v59, %v364_v24 }
 0x213   :  { %v369_v31 = vsub.f32 %v328_v0, %v364_v24  ;;  %v370_v33 = vsub.f32 %v331_v1, %v364_v24  ;;  %v371_v35 = vsub.f32 %v334_v3, %v364_v24  ;;  %v372_v37 = vsub.f32 %v337_v55, %v364_v24 }
 0x214   :  { %v378_v29 = vmul.f32 1.442695, %v365_v25  ;;  %v380_v30 = vmul.f32 1.442695, %v366_v26  ;;  %v382_v32 = vmul.f32 1.442695, %v367_v27  ;;  %v373_v39 = vsub.f32 %v340_v57, %v364_v24 }
 0x215   :  { %v384_v34 = vmul.f32 1.442695, %v368_v28  ;;  %v386_v36 = vmul.f32 1.442695, %v369_v31  ;;  %v388_v38 = vmul.f32 1.442695, %v370_v33  ;;  %v374_v41 = vsub.f32 %v343_v61, %v364_v24 }
 0x216   :  { %602 = vpow2.f32 %v378_v29  ;;  %v390_v40 = vmul.f32 1.442695, %v371_v35  ;;  %v392_v42 = vmul.f32 1.442695, %v372_v37  ;;  %v375_v46 = vsub.f32 %v346_v62, %v364_v24 }
 0x217   :  { %604 = vpow2.f32 %v380_v30  ;;  %v394_v47 = vmul.f32 1.442695, %v373_v39  ;;  %v376_v51 = vsub.f32 %v349_v7, %v364_v24  ;;  %v396_v52 = vmul.f32 1.442695, %v374_v41 }
 0x218   :  { %606 = vpow2.f32 %v382_v32  ;;  %v377_v56 = vsub.f32 %v352_v12, %v364_v24  ;;  %v398_v57 = vmul.f32 1.442695, %v375_v46 }
 0x219   :  { %608 = vpow2.f32 %v384_v34  ;;  %v400_v61 = vmul.f32 1.442695, %v376_v51 }
 0x21a   :  { %610 = vpow2.f32 %v386_v36  ;;  %v402_v62 = vmul.f32 1.442695, %v377_v56 }
 0x21b   :  { %612 = vpow2.f32 %v388_v38 }
 0x21c   :  { %614 = vpow2.f32 %v390_v40 }
 0x21d   :  { %616 = vpow2.f32 %v392_v42 }
 0x21e   :  { %618 = vpow2.f32 %v394_v47 }
 0x21f   :  { %620 = vpow2.f32 %v396_v52 }
 0x220   :  { %v603_v43 = vpop.eup %602  ;;  %622 = vpow2.f32 %v398_v57 }
 0x221   :  { %v605_v45 = vpop.eup %604  ;;  %624 = vpow2.f32 %v400_v61 }
 0x222   :  { %v404_v48 = vadd.f32 %v605_v45, %v603_v43  ;;  %v607_v50 = vpop.eup %606  ;;  %626 = vpow2.f32 %v402_v62 }
 0x223   :  { %v609_v55 = vpop.eup %608 }
 0x224   :  { %v405_v53 = vadd.f32 %v607_v50, %v404_v48  ;;  %v611_v59 = vpop.eup %610 }
 0x225   :  { %v613_v1 = vpop.eup %612 }
 0x226   :  { %v406_v58 = vadd.f32 %v609_v55, %v405_v53  ;;  %v615_v3 = vpop.eup %614 }
 0x227   :  { %v617_v5 = vpop.eup %616 }
 0x228   :  { %v407_v0 = vadd.f32 %v611_v59, %v406_v58  ;;  %v619_v9 = vpop.eup %618 }
 0x229   :  { %v621_v11 = vpop.eup %620 }
 0x22a   :  { %v408_v2 = vadd.f32 %v613_v1, %v407_v0  ;;  %v623_v14 = vpop.eup %622 }
 0x22b   :  { %v625_v18 = vpop.eup %624 }
 0x22c   :  { %v409_v4 = vadd.f32 %v615_v3, %v408_v2  ;;  %v627_v23 = vpop.eup %626 }
 0x22e   :  { %v410_v7 = vadd.f32 %v617_v5, %v409_v4 }
 0x230   :  { %v411_v10 = vadd.f32 %v619_v9, %v410_v7 }
 0x232   :  { %v412_v12 = vadd.f32 %v621_v11, %v411_v10 }
 0x234   :  { %v413_v17 = vadd.f32 %v623_v14, %v412_v12 }
 0x236   :  { %v414_v21 = vadd.f32 %v625_v18, %v413_v17 }
 0x238   :  { %v415_v24 = vadd.f32 %v627_v23, %v414_v21 }
 0x23a   :  { %628 = vrcp.f32 %v415_v24 }
 0x244   :  { %v629_v25 = vpop.eup %628 }
 0x245   :  { %v417_v26 = vmul.f32 %v629_v25, %v603_v43  ;;  %v418_v27 = vmul.f32 %v629_v25, %v605_v45  ;;  %v419_v28 = vmul.f32 %v629_v25, %v607_v50  ;;  %v420_v29 = vmul.f32 %v629_v25, %v609_v55 }
 0x246   :  { %v421_v32 = vmul.f32 %v629_v25, %v611_v59  ;;  %v422_v34 = vmul.f32 %v629_v25, %v613_v1  ;;  %v423_v39 = vmul.f32 %v629_v25, %v615_v3  ;;  %v424_v42 = vmul.f32 %v629_v25, %v617_v5 }
 0x247   :  { %v430_v30 = vmul.f32 %v782_v44, %v417_v26  ;;  %v431_v31 = vmul.f32 %v801_v54, %v418_v27  ;;  %v432_v33 = vmul.f32 %v819_v63, %v419_v28  ;;  %v433_v35 = vmul.f32 %v839_v8, %v420_v29 }
 0x248   :  { %v434_v40 = vmul.f32 %v856_v15, %v421_v32  ;;  %v435_v54 = vmul.f32 %v859_v16, %v422_v34  ;;  %v425_v45 = vmul.f32 %v629_v25, %v619_v9  ;;  %v436_v8 = vmul.f32 %v868_v20, %v423_v39 }
 0x249   :  { %v444_v36 = vsel %vm443_vm3, %v430_v30, 0.0  ;;  %v445_v37 = vsel %vm443_vm3, %v431_v31, 0.0  ;;  %v447_v41 = vsel %vm443_vm3, %v432_v33, 0.0  ;;  %v449_v43 = vsel %vm443_vm3, %v433_v35, 0.0 }
 0x24a   :  { %v446_v38 = vadd.f32 %v445_v37, %v444_v36  ;;  %v451_v46 = vsel %vm443_vm3, %v434_v40, 0.0  ;;  %v426_v48 = vmul.f32 %v629_v25, %v621_v11  ;;  %v437_v50 = vmul.f32 %v786_v49, %v424_v42 }
 0x24b   :  { %v453_v15 = vsel %vm443_vm3, %v435_v54, 0.0  ;;  %v427_v52 = vmul.f32 %v629_v25, %v623_v14  ;;  %v438_v53 = vmul.f32 %v807_v60, %v425_v45  ;;  %v455_v16 = vsel %vm443_vm3, %v436_v8, 0.0 }
 0x24c   :  { %v448_v44 = vadd.f32 %v447_v41, %v446_v38  ;;  %v428_v56 = vmul.f32 %v629_v25, %v625_v18  ;;  %v439_v57 = vmul.f32 %v827_v6, %v426_v48  ;;  %v457_v20 = vsel %vm443_vm3, %v437_v50, 0.0 }
 0x24d   :  { %v429_v59 = vmul.f32 %v629_v25, %v627_v23  ;;  %v440_v61 = vmul.f32 %v846_v13, %v427_v52  ;;  %v459_v49 = vsel %vm443_vm3, %v438_v53, 0.0 }
 0x24e   :  { %v450_v63 = vadd.f32 %v449_v43, %v448_v44  ;;  %v441_v1 = vmul.f32 %v865_v19, %v428_v56  ;;  %v461_v62 = vsel %vm443_vm3, %v439_v57, 0.0 }
 0x24f   :  { %v442_v2 = vmul.f32 %v873_v22, %v429_v59  ;;  %v463_v3 = vsel %vm443_vm3, %v440_v61, 0.0 }
 0x250   :  { %v452_v47 = vadd.f32 %v451_v46, %v450_v63  ;;  %v465_v6 = vsel %vm443_vm3, %v441_v1, 0.0 }
 0x251   :  { %v467_v7 = vsel %vm443_vm3, %v442_v2, 0.0 }
 0x252   :  { %v454_v51 = vadd.f32 %v453_v15, %v452_v47 }
 0x254   :  { %v456_v55 = vadd.f32 %v455_v16, %v454_v51 }
 0x256   :  { %v458_v58 = vadd.f32 %v457_v20, %v456_v55 }
 0x258   :  { %v460_v0 = vadd.f32 %v459_v49, %v458_v58 }
 0x25a   :  { %v462_v60 = vadd.f32 %v461_v62, %v460_v0 }
 0x25c   :  { %v464_v4 = vadd.f32 %v463_v3, %v462_v60 }
 0x25e   :  { %v466_v5 = vadd.f32 %v465_v6, %v464_v4 }
 0x260   :  { %v468_v9 = vadd.f32 %v467_v7, %v466_v5 }
 0x262   :  { %470 = vrot.lane.b32.xlu0 %v468_v9, %s634_s17 }
 0x2d4   :  { %v471_v13 = vpop.permute.xlu0 %470 }
 0x2d5   :  { %473 = vst.msk [vmem:[%s931_s5] sm:$0xff] %vm43_vm1, %v471_v13 }

</bundles_post_ra>
